<compile_context>
chip_gen: v7x
topology: tpu7x:2x2x1
jax: 0.10.0
libtpu: 0.0.40
codegen_flags: <defaults>
</compile_context>

<pallas_src>
import jax
import jax.numpy as jnp
import numpy as np
from jax.experimental import pallas as pl
from jax.experimental.pallas import tpu as pltpu


# ----------------------------------------------------------------------------
# Kernels
# ----------------------------------------------------------------------------
def _ca_enhance_kernel(rgb_ref, depth_ref, w1r_ref, w1d_ref, w2_ref, out_ref):
    # rgb_ref / depth_ref / out_ref : (Bt, Ch, HW)  (full Ch / HW extent)
    # w1r_ref / w1d_ref             : (Cr, Ch)      fc1 weight, rgb/depth halves
    # w2_ref                        : (Ch, Cr)      fc2 weight
    depth = depth_ref[...]

    # AdaptiveMaxPool2d(1) over cat([rgb, depth], dim=1): per-channel spatial
    # max.  Mosaic masks the padded lanes of the edge vreg when HW % 128 != 0.
    max_rgb = jnp.max(rgb_ref[...], axis=-1).astype(jnp.float32)   # (Bt, Ch)
    max_dep = jnp.max(depth, axis=-1).astype(jnp.float32)          # (Bt, Ch)

    # fc1 (1x1 conv, no bias) on the VPU: contraction dim is tiny, so a
    # broadcast-multiply + lane reduce beats routing through the MXU, and the
    # split weight removes the pooled-vector concat entirely.
    w1r = w1r_ref[...].astype(jnp.float32)                          # (Cr, Ch)
    w1d = w1d_ref[...].astype(jnp.float32)                          # (Cr, Ch)
    h = (jnp.sum(max_rgb[:, None, :] * w1r[None, :, :], axis=-1)
         + jnp.sum(max_dep[:, None, :] * w1d[None, :, :], axis=-1))  # (Bt, Cr)
    h = jnp.maximum(h, 0.0)

    # fc2 (1x1 conv, no bias) + sigmoid, also on the VPU.
    w2 = w2_ref[...].astype(jnp.float32)                             # (Ch, Cr)
    attn = jnp.sum(h[:, None, :] * w2[None, :, :], axis=-1)          # (Bt, Ch)

    # Cast the gate once; the only large elementwise op stays in the input
    # dtype (bf16 fast path on v6e/v7x, f32 otherwise).
    gate = jax.nn.sigmoid(attn).astype(out_ref.dtype)                # (Bt, Ch)
    out_ref[...] = depth * gate[:, :, None]


def _make_pool_gate_kernel(hw, hwt):
    """Two-pass path, pass A: running spatial max + FCs + sigmoid -> gate."""
    needs_mask = (hw % hwt) != 0

    def kernel(rgb_ref, depth_ref, w1r_ref, w1d_ref, w2_ref, gate_ref,
               mr_sc, md_sc):
        s = pl.program_id(1)

        @pl.when(s == 0)
        def _():
            mr_sc[...] = jnp.full(mr_sc.shape, -jnp.inf, mr_sc.dtype)
            md_sc[...] = jnp.full(md_sc.shape, -jnp.inf, md_sc.dtype)

        rgb = rgb_ref[...]
        dep = depth_ref[...]
        if needs_mask:
            # Edge spatial block: lanes past the true extent hold undefined
            # padding -> mask them out of the max with -inf.
            pos = s * hwt + jax.lax.broadcasted_iota(jnp.int32, rgb.shape, 2)
            valid = pos < hw
            rgb = jnp.where(valid, rgb, -jnp.inf)
            dep = jnp.where(valid, dep, -jnp.inf)

        mr_sc[...] = jnp.maximum(
            mr_sc[...], jnp.max(rgb, axis=-1, keepdims=True).astype(jnp.float32))
        md_sc[...] = jnp.maximum(
            md_sc[...], jnp.max(dep, axis=-1, keepdims=True).astype(jnp.float32))

        @pl.when(s == pl.num_programs(1) - 1)
        def _():
            max_rgb = mr_sc[...][..., 0]                             # (Bt, Ch)
            max_dep = md_sc[...][..., 0]                             # (Bt, Ch)
            w1r = w1r_ref[...].astype(jnp.float32)
            w1d = w1d_ref[...].astype(jnp.float32)
            h = (jnp.sum(max_rgb[:, None, :] * w1r[None, :, :], axis=-1)
                 + jnp.sum(max_dep[:, None, :] * w1d[None, :, :], axis=-1))
            h = jnp.maximum(h, 0.0)
            w2 = w2_ref[...].astype(jnp.float32)
            attn = jnp.sum(h[:, None, :] * w2[None, :, :], axis=-1)  # (Bt, Ch)
            gate_ref[...] = jax.nn.sigmoid(attn)[:, :, None].astype(gate_ref.dtype)

    return kernel


def _apply_gate_kernel(depth_ref, gate_ref, out_ref):
    """Two-pass path, pass B: spatially-parallel gated multiply."""
    out_ref[...] = depth_ref[...] * gate_ref[...].astype(out_ref.dtype)


# ----------------------------------------------------------------------------
# Tiling helpers
# ----------------------------------------------------------------------------
def _vmem_capacity_bytes():
    """Physical VMEM of the attached TPU; conservative v7x value if unknown."""
    try:
        return int(pltpu.get_tpu_info().vmem_capacity_bytes)
    except Exception:
        return 64 << 20


def _pick_batch_tile(B, per_batch_bytes, target_bytes, min_bytes):
    """Largest divisor of B whose block <= target_bytes, preferring >= 4 grid
    steps (2 per v7x TensorCore), then >= 2, while blocks stay >= min_bytes."""
    divisors = [d for d in range(1, B + 1) if B % d == 0]
    cap = max(1, target_bytes // max(per_batch_bytes, 1))
    fitting = [d for d in divisors if d <= cap] or [1]
    bt = max(fitting)
    for steps in (4, 2):
        cands = [d for d in fitting
                 if B // d >= steps and d * per_batch_bytes >= min_bytes]
        if cands:
            if B // bt < steps:
                bt = max(cands)
            break
    return bt


def _pick_spatial_tile(Ch, HW, itemsize, target_bytes):
    """Spatial tile (multiple of 128 lanes, never exceeding the array extent)."""
    lanes = (target_bytes // max(Ch * itemsize, 1)) // 128 * 128
    lanes = max(128, lanes)
    lanes = min(lanes, (HW // 128) * 128)
    return lanes


# ----------------------------------------------------------------------------
# Wrapper
# ----------------------------------------------------------------------------
def ca_enhance(rgb, depth, w1, w2, *,
               target_block_bytes=2 << 20,
               min_block_bytes=1 << 20,
               spatial_tile_bytes=2 << 20,
               single_pass_max_block_bytes=None):
    """rgb, depth: (B, Ch, H, W). w1: (C//16, C), w2: (Ch, C//16), C = 2*Ch."""
    B, Ch, H, W = depth.shape
    assert rgb.shape == depth.shape
    Cr = w1.shape[0]
    HW = H * W
    itemsize = jnp.dtype(depth.dtype).itemsize

    # No spatial padding: blocks cover the full (Ch, HW) extent.
    rgb_f = rgb.reshape(B, Ch, HW)
    depth_f = depth.reshape(B, Ch, HW)

    # fc1 weight split into the columns that multiply rgb vs depth maxima
    # (matches the cat([rgb, depth], dim=1) channel order).
    w1_rgb = w1[:, :Ch]
    w1_dep = w1[:, Ch:]
    weight_bytes = (w1.size + w2.size) * jnp.dtype(w1.dtype).itemsize

    per_batch_bytes = Ch * HW * itemsize
    if single_pass_max_block_bytes is None:
        # 3 tensors x 2 pipeline buffers per block; stay well inside scoped
        # VMEM on every generation (v7x physical VMEM is smallest: 64 MiB/TC).
        single_pass_max_block_bytes = min(4 << 20, _vmem_capacity_bytes() // 16)

    compiler_1d = pltpu.CompilerParams(
        dimension_semantics=("parallel",), vmem_limit_bytes=32 << 20)

    use_two_pass = (per_batch_bytes > single_pass_max_block_bytes) and HW >= 128

    if not use_two_pass:
        # ---------------- single-pass path ----------------
        Bt = _pick_batch_tile(B, per_batch_bytes, target_block_bytes,
                              min_block_bytes)
        grid = (B // Bt,)
        data_block = (Bt, Ch, HW)
        data_map = lambda b: (b, 0, 0)
        wmap = lambda b: (0, 0)

        cost = pl.CostEstimate(
            flops=3 * B * Ch * HW + 4 * B * Cr * Ch + 2 * B * Ch * Cr,
            transcendentals=B * Ch,
            bytes_accessed=3 * B * Ch * HW * itemsize + weight_bytes,
        )

        out_flat = pl.pallas_call(
            _ca_enhance_kernel,
            out_shape=jax.ShapeDtypeStruct((B, Ch, HW), depth.dtype),
            grid_spec=pltpu.PrefetchScalarGridSpec(
                num_scalar_prefetch=0,
                grid=grid,
                in_specs=[
                    pl.BlockSpec(data_block, data_map),
                    pl.BlockSpec(data_block, data_map),
                    pl.BlockSpec(w1_rgb.shape, wmap),
                    pl.BlockSpec(w1_dep.shape, wmap),
                    pl.BlockSpec(w2.shape, wmap),
                ],
                out_specs=pl.BlockSpec(data_block, data_map),
            ),
            compiler_params=compiler_1d,
            cost_estimate=cost,
        )(rgb_f, depth_f, w1_rgb, w1_dep, w2)
        return out_flat.reshape(B, Ch, H, W)

    # ---------------- two-pass path (large feature maps / small batch) -------
    HWt = _pick_spatial_tile(Ch, HW, itemsize, spatial_tile_bytes)
    n_s = pl.cdiv(HW, HWt)
    per_block_bytes = Ch * HWt * itemsize
    Bt = _pick_batch_tile(B, per_block_bytes, target_block_bytes,
                          min_block_bytes)
    grid = (B // Bt, n_s)
    data_block = (Bt, Ch, HWt)
    data_map = lambda b, s: (b, 0, s)
    gate_block = (Bt, Ch, 1)
    gate_map = lambda b, s: (b, 0, 0)
    wmap = lambda b, s: (0, 0)

    # Pass A: running per-channel spatial max + tiny FCs + sigmoid -> gate.
    gate = pl.pallas_call(
        _make_pool_gate_kernel(HW, HWt),
        out_shape=jax.ShapeDtypeStruct((B, Ch, 1), jnp.float32),
        grid_spec=pltpu.PrefetchScalarGridSpec(
            num_scalar_prefetch=0,
            grid=grid,
            in_specs=[
                pl.BlockSpec(data_block, data_map),
                pl.BlockSpec(data_block, data_map),
                pl.BlockSpec(w1_rgb.shape, wmap),
                pl.BlockSpec(w1_dep.shape, wmap),
                pl.BlockSpec(w2.shape, wmap),
            ],
            out_specs=pl.BlockSpec(gate_block, gate_map),
            scratch_shapes=[pltpu.VMEM((Bt, Ch, 1), jnp.float32),
                            pltpu.VMEM((Bt, Ch, 1), jnp.float32)],
        ),
        compiler_params=pltpu.CompilerParams(
            dimension_semantics=("parallel", "arbitrary"),
            vmem_limit_bytes=32 << 20),
        cost_estimate=pl.CostEstimate(
            flops=2 * B * Ch * HW + 4 * B * Cr * Ch + 2 * B * Ch * Cr,
            transcendentals=B * Ch,
            bytes_accessed=2 * B * Ch * HW * itemsize + weight_bytes + B * Ch * 4,
        ),
    )(rgb_f, depth_f, w1_rgb, w1_dep, w2)

    # Pass B: gated multiply, both grid axes parallel (uses both v7x cores
    # even at batch 1).
    out_flat = pl.pallas_call(
        _apply_gate_kernel,
        out_shape=jax.ShapeDtypeStruct((B, Ch, HW), depth.dtype),
        grid_spec=pltpu.PrefetchScalarGridSpec(
            num_scalar_prefetch=0,
            grid=grid,
            in_specs=[
                pl.BlockSpec(data_block, data_map),
                pl.BlockSpec(gate_block, gate_map),
            ],
            out_specs=pl.BlockSpec(data_block, data_map),
        ),
        compiler_params=pltpu.CompilerParams(
            dimension_semantics=("parallel", "parallel"),
            vmem_limit_bytes=32 << 20),
        cost_estimate=pl.CostEstimate(
            flops=B * Ch * HW,
            transcendentals=0,
            bytes_accessed=2 * B * Ch * HW * itemsize + B * Ch * 4,
        ),
    )(depth_f, gate)
    return out_flat.reshape(B, Ch, H, W)


def ca_enhance_ref(rgb, depth, w1, w2):
    """Pure-JAX reference mirroring the PyTorch forward."""
    x = jnp.concatenate([rgb, depth], axis=1)                  # (B, C, H, W)
    pooled = jnp.max(x, axis=(2, 3))                           # (B, C)
    h = jnp.maximum(pooled @ w1.T, 0.0)                        # (B, C//16)
    attn = h @ w2.T                                            # (B, Ch)
    gate = jax.nn.sigmoid(attn)[:, :, None, None]              # (B, Ch, 1, 1)
    return depth * gate


if __name__ == "__main__":
    # in_planes = 32 -> rgb/depth each have 16 channels, fc1: 32 -> 2, fc2: 2 -> 16.
    in_planes = 32
    Ch = in_planes // 2
    Cr = in_planes // 16

    key = jax.random.PRNGKey(0)
    _, _, k_w1, k_w2 = jax.random.split(key, 4)
    w1 = jax.random.normal(k_w1, (Cr, in_planes), jnp.float32) * (1.0 / np.sqrt(in_planes))
    w2 = jax.random.normal(k_w2, (Ch, Cr), jnp.float32) * (1.0 / np.sqrt(Cr))

    def check(B, H, W, **kwargs):
        kr, kd = jax.random.split(jax.random.fold_in(key, 1000 * H + W + B), 2)
        rgb = jax.random.normal(kr, (B, Ch, H, W), jnp.float32)
        depth = jax.random.normal(kd, (B, Ch, H, W), jnp.float32)
        out = ca_enhance(rgb, depth, w1, w2, **kwargs)
        jax.block_until_ready(out)
        ref = ca_enhance_ref(rgb, depth, w1, w2)
        np.testing.assert_allclose(np.asarray(out), np.asarray(ref),
                                   rtol=1e-5, atol=1e-5)

    # Lane-aligned spatial extent (HW % 128 == 0): single-pass path.
    check(2, 16, 16)
    # Non-aligned spatial extent (HW = 100): masked edge vreg, no wrapper pad.
    check(2, 10, 10)
    # Force the two-pass (running-max + gated-multiply) path with a partial
    # edge spatial block (HW = 360, tile = 128) to exercise the in-kernel mask.
    check(2, 18, 20, single_pass_max_block_bytes=1, spatial_tile_bytes=8192)

    print("KERNEL_OK")
</pallas_src>

<mosaic_0001>
module attributes {stable_mosaic.version = 11 : i64} {
  func.func @_ca_enhance_kernel(%arg0: i32, %arg1: memref<2x16x256xf32, #tpu.memory_space<vmem>>, %arg2: memref<2x16x256xf32, #tpu.memory_space<vmem>>, %arg3: memref<2x16xf32, #tpu.memory_space<vmem>>, %arg4: memref<2x16xf32, #tpu.memory_space<vmem>>, %arg5: memref<16x2xf32, #tpu.memory_space<vmem>>, %arg6: memref<2x16x256xf32, #tpu.memory_space<vmem>>) attributes {dimension_semantics = [#tpu.dimension_semantics<parallel>], iteration_bounds = array<i64: 1>, scalar_prefetch = 0 : i64, scratch_operands = 0 : i64, tpu.core_type = #tpu.core_type<tc>, window_params = [{transform_indices = @transform_0, window_bounds = array<i64: 2, 16, 256>}, {transform_indices = @transform_1, window_bounds = array<i64: 2, 16, 256>}, {pipeline_mode = #tpu.pipeline_mode<synchronous>, transform_indices = @transform_2, window_bounds = array<i64: 2, 16>}, {pipeline_mode = #tpu.pipeline_mode<synchronous>, transform_indices = @transform_3, window_bounds = array<i64: 2, 16>}, {pipeline_mode = #tpu.pipeline_mode<synchronous>, transform_indices = @transform_4, window_bounds = array<i64: 16, 2>}, {transform_indices = @transform_5, window_bounds = array<i64: 2, 16, 256>}]} {
    %c0 = arith.constant 0 : index
    %c0_0 = arith.constant 0 : index
    %c0_1 = arith.constant 0 : index
    %0 = vector.load %arg2[%c0, %c0_0, %c0_1] : memref<2x16x256xf32, #tpu.memory_space<vmem>>, vector<2x16x256xf32>
    %c0_2 = arith.constant 0 : index
    %c0_3 = arith.constant 0 : index
    %c0_4 = arith.constant 0 : index
    %1 = vector.load %arg1[%c0_2, %c0_3, %c0_4] : memref<2x16x256xf32, #tpu.memory_space<vmem>>, vector<2x16x256xf32>
    %cst = arith.constant dense<0xFF800000> : vector<2x16xf32>
    %2 = vector.multi_reduction <maximumf>, %1, %cst [2] : vector<2x16x256xf32> to vector<2x16xf32>
    %cst_5 = arith.constant dense<0xFF800000> : vector<2x16xf32>
    %3 = vector.multi_reduction <maximumf>, %0, %cst_5 [2] : vector<2x16x256xf32> to vector<2x16xf32>
    %c0_6 = arith.constant 0 : index
    %c0_7 = arith.constant 0 : index
    %4 = vector.load %arg3[%c0_6, %c0_7] : memref<2x16xf32, #tpu.memory_space<vmem>>, vector<2x16xf32>
    %c0_8 = arith.constant 0 : index
    %c0_9 = arith.constant 0 : index
    %5 = vector.load %arg4[%c0_8, %c0_9] : memref<2x16xf32, #tpu.memory_space<vmem>>, vector<2x16xf32>
    %6 = vector.shape_cast %2 : vector<2x16xf32> to vector<2x1x16xf32>
    %7 = vector.shape_cast %4 : vector<2x16xf32> to vector<1x2x16xf32>
    %8 = vector.broadcast %6 : vector<2x1x16xf32> to vector<2x2x16xf32>
    %9 = vector.broadcast %7 : vector<1x2x16xf32> to vector<2x2x16xf32>
    %10 = arith.mulf %8, %9 : vector<2x2x16xf32>
    %cst_10 = arith.constant dense<0.000000e+00> : vector<2x2xf32>
    %11 = vector.multi_reduction <add>, %10, %cst_10 [2] : vector<2x2x16xf32> to vector<2x2xf32>
    %12 = vector.shape_cast %3 : vector<2x16xf32> to vector<2x1x16xf32>
    %13 = vector.shape_cast %5 : vector<2x16xf32> to vector<1x2x16xf32>
    %14 = vector.broadcast %12 : vector<2x1x16xf32> to vector<2x2x16xf32>
    %15 = vector.broadcast %13 : vector<1x2x16xf32> to vector<2x2x16xf32>
    %16 = arith.mulf %14, %15 : vector<2x2x16xf32>
    %cst_11 = arith.constant dense<0.000000e+00> : vector<2x2xf32>
    %17 = vector.multi_reduction <add>, %16, %cst_11 [2] : vector<2x2x16xf32> to vector<2x2xf32>
    %18 = arith.addf %11, %17 : vector<2x2xf32>
    %cst_12 = arith.constant 0.000000e+00 : f32
    %19 = vector.broadcast %cst_12 : f32 to vector<2x2xf32>
    %20 = arith.maximumf %18, %19 : vector<2x2xf32>
    %c0_13 = arith.constant 0 : index
    %c0_14 = arith.constant 0 : index
    %21 = vector.load %arg5[%c0_13, %c0_14] : memref<16x2xf32, #tpu.memory_space<vmem>>, vector<16x2xf32>
    %22 = vector.shape_cast %20 : vector<2x2xf32> to vector<2x1x2xf32>
    %23 = vector.shape_cast %21 : vector<16x2xf32> to vector<1x16x2xf32>
    %24 = vector.broadcast %22 : vector<2x1x2xf32> to vector<2x16x2xf32>
    %25 = vector.broadcast %23 : vector<1x16x2xf32> to vector<2x16x2xf32>
    %26 = arith.mulf %24, %25 : vector<2x16x2xf32>
    %cst_15 = arith.constant dense<0.000000e+00> : vector<2x16xf32>
    %27 = vector.multi_reduction <add>, %26, %cst_15 [2] : vector<2x16x2xf32> to vector<2x16xf32>
    %28 = arith.negf %27 : vector<2x16xf32>
    %29 = math.exp %28 : vector<2x16xf32>
    %cst_16 = arith.constant 1.000000e+00 : f32
    %30 = vector.broadcast %cst_16 : f32 to vector<2x16xf32>
    %31 = arith.addf %30, %29 : vector<2x16xf32>
    %32 = arith.divf %30, %31 : vector<2x16xf32>
    %33 = vector.shape_cast %32 : vector<2x16xf32> to vector<2x16x1xf32>
    %34 = vector.broadcast %33 : vector<2x16x1xf32> to vector<2x16x256xf32>
    %35 = arith.mulf %0, %34 : vector<2x16x256xf32>
    %c0_17 = arith.constant 0 : index
    %c0_18 = arith.constant 0 : index
    %c0_19 = arith.constant 0 : index
    %36 = vector.load %arg6[%c0_17, %c0_18, %c0_19] : memref<2x16x256xf32, #tpu.memory_space<vmem>>, vector<2x16x256xf32>
    tpu.vector_store %arg6[%c0_17, %c0_18, %c0_19], %35 {strides = array<i32>} : memref<2x16x256xf32, #tpu.memory_space<vmem>>, vector<2x16x256xf32>,
    return
  }
  func.func @transform_0(%arg0: i32) -> (i32, i32, i32) {
    %c0_i32 = arith.constant 0 : i32
    %c0_i32_0 = arith.constant 0 : i32
    %c0_i32_1 = arith.constant 0 : i32
    return %arg0, %c0_i32, %c0_i32_0 : i32, i32, i32
  }
  func.func @transform_1(%arg0: i32) -> (i32, i32, i32) {
    %c0_i32 = arith.constant 0 : i32
    %c0_i32_0 = arith.constant 0 : i32
    %c0_i32_1 = arith.constant 0 : i32
    return %arg0, %c0_i32, %c0_i32_0 : i32, i32, i32
  }
  func.func @transform_2(%arg0: i32) -> (i32, i32) {
    %c0_i32 = arith.constant 0 : i32
    %c0_i32_0 = arith.constant 0 : i32
    %c0_i32_1 = arith.constant 0 : i32
    return %c0_i32, %c0_i32_0 : i32, i32
  }
  func.func @transform_3(%arg0: i32) -> (i32, i32) {
    %c0_i32 = arith.constant 0 : i32
    %c0_i32_0 = arith.constant 0 : i32
    %c0_i32_1 = arith.constant 0 : i32
    return %c0_i32, %c0_i32_0 : i32, i32
  }
  func.func @transform_4(%arg0: i32) -> (i32, i32) {
    %c0_i32 = arith.constant 0 : i32
    %c0_i32_0 = arith.constant 0 : i32
    %c0_i32_1 = arith.constant 0 : i32
    return %c0_i32, %c0_i32_0 : i32, i32
  }
  func.func @transform_5(%arg0: i32) -> (i32, i32, i32) {
    %c0_i32 = arith.constant 0 : i32
    %c0_i32_0 = arith.constant 0 : i32
    %c0_i32_1 = arith.constant 0 : i32
    return %arg0, %c0_i32, %c0_i32_0 : i32, i32, i32
  }
}

</mosaic_0001>

<bundles_post_ra>
// kernel: tpu_custom_call.1
= control target key start
LH: loop header
LB: loop body
LE: loop exit
PB: predicated region body
PF: predicated region fallthrough
CT: control target
= control target key end

     0   :  { %10 = vsyncpa [#allocation3], 0  ;;  %s1228_s0 = inlined_call_operand.hbm [shape: f32[2,16,256], index: 0, kind: input, shape index: {}]   ;;  %s1229_s1 = inlined_call_operand.hbm [shape: f32[2,16,256], index: 1, kind: input, shape index: {}]   ;;  %s1230_s2 = inlined_call_operand.vmem [shape: f32[2,16], index: 2, kind: input, shape index: {}]   ;;  %s1231_s3 = inlined_call_operand.vmem [shape: f32[2,16], index: 3, kind: input, shape index: {}]   ;;  %s1232_s4 = inlined_call_operand.vmem [shape: f32[16,2], index: 4, kind: input, shape index: {}]   ;;  %s1233_s5 = inlined_call_operand.hbm [shape: f32[2,16,256], index: 5, kind: output, shape index: {}]  }
   0x1   :  { %11 = vsyncpa [#allocation6], 0 }
   0x2   :  { %12 = vsyncpa [#allocation4], 0  ;;  %s956_s18 = smov [#allocation2]   ;;  %s884_s22 = scalar_lea.hbm %s1228_s0, 1024 }
   0x3   :  { %s18_s19 = sshll.u32 %s956_s18, 4  ;;  %p885_p0 = scmp.ne.s32.totalorder %s1228_s0, %s884_s22  ;;  %s19_s19 = int_to_ptr.vmem [resolvable:$true] %s18_s19 }
   0x4   :  { %p888_p1 = scmp.lt.u32.totalorder %s884_s22, %s1228_s0 }
   0x6   :  { %p890_p2 = pnand %p888_p1, %p885_p0 }
   0x8   :  { %893 = shalt.err (!%p890_p2)
}
   0x9   :  { %s894_s27 = scalar_lea.vmem %s19_s19, 1024  ;;  %p899_p4 = scmp.lt.s32.totalorder %s19_s19, %s19_s19 }
   0xa   :  { %p895_p3 = scmp.ne.s32.totalorder %s19_s19, %s894_s27  ;;  %p900_p5 = scmp.lt.s32.totalorder %s894_s27, %s894_s27 }
   0xc   :  { %p901_p6 = por %p900_p5, %p899_p4 }
   0xe   :  { %p902_p7 = pnand %p901_p6, %p895_p3 }
  0x10   :  { %905 = shalt.err (!%p902_p7)
}
  0x11   :  { %s957_s28 = smov 256   ;;  %s958_s29 = smov 16  }
  0x12   :  { %24 = dma.hbm_to_vmem [thread:$0]  %s1228_s0, 1024, %s19_s19, [#allocation3], %s957_s28, %s957_s28, %s958_s29  }
  0x13   :  { %s959_s7 = smov [#allocation5]   ;;  %s906_s11 = scalar_lea.hbm %s1229_s1, 1024 }
  0x14   :  { %s30_s8 = sshll.u32 %s959_s7, 4  ;;  %p907_p8 = scmp.ne.s32.totalorder %s1229_s1, %s906_s11  ;;  %s31_s8 = int_to_ptr.vmem [resolvable:$true] %s30_s8 }
  0x15   :  { %p910_p9 = scmp.lt.u32.totalorder %s906_s11, %s1229_s1 }
  0x17   :  { %p912_p10 = pnand %p910_p9, %p907_p8 }
  0x19   :  { %915 = shalt.err (!%p912_p10)
}
  0x1a   :  { %s916_s16 = scalar_lea.vmem %s31_s8, 1024  ;;  %p921_p12 = scmp.lt.s32.totalorder %s31_s8, %s31_s8 }
  0x1b   :  { %p917_p11 = scmp.ne.s32.totalorder %s31_s8, %s916_s16  ;;  %p922_p13 = scmp.lt.s32.totalorder %s916_s16, %s916_s16 }
  0x1d   :  { %p923_p0 = por %p922_p13, %p921_p12 }
  0x1f   :  { %p924_p1 = pnand %p923_p0, %p917_p11 }
  0x21   :  { %927 = shalt.err (!%p924_p1)
}
  0x22   :  { %36 = dma.hbm_to_vmem [thread:$0]  %s1229_s1, 1024, %s31_s8, [#allocation6], %s957_s28, %s957_s28, %s958_s29  }
  0x23   :  { %950 = dma.done.wait [#allocation3], 1024  }
  0x24   :  { %951 = vsyncadd [#allocation3], 4294966272 }
  0x25   :  { %952 = dma.done.wait [#allocation6], 1024  }
  0x26   :  { %953 = vsyncadd [#allocation6], 4294966272  ;;  %v61_v0 = vld [vmem:[#allocation2 + $0x20] sm:$0xff]  ;;  %v62_v1 = vld [vmem:[#allocation2 + $0x28] sm:$0xff]  ;;  %v92_v24 = vlaneseq  ;;  %v960_v32 = vmov 0   ;;  %vm169_vm0 = vcmask 130112  }
  0x27   :  { %v57_v2 = vld [vmem:[#allocation2] sm:$0xff]  ;;  %v71_v3 = vmax.f32 %v61_v0, %v62_v1  ;;  %v58_v4 = vld [vmem:[#allocation2 + $0x8] sm:$0xff]  ;;  %v63_v5 = vld [vmem:[#allocation2 + $0x30] sm:$0xff]  ;;  %867 = vset.pattern.permute.xlu1 %v960_v32  ;;  %866 = vset.pattern.permute.xlu0 %v960_v32  ;;  %vm198_vm1 = vcmask 1041409   ;;  %vm203_vm2 = vcmask 123904   ;;  %vm748_vm3 = vcmask 1042434  }
  0x28   :  { %v64_v6 = vld [vmem:[#allocation2 + $0x38] sm:$0xff]  ;;  %v65_v7 = vmax.f32 %v57_v2, %v58_v4  ;;  %v59_v8 = vld [vmem:[#allocation2 + $0x10] sm:$0xff]  ;;  %v1026_v14 = vld [vmem:[#allocation5] sm:$0xff]  ;;  %v1047_v25 = vshrl.u32 %v92_v24, 7  ;;  %vm750_vm4 = vcmask 1043459   ;;  %vm752_vm5 = vcmask 1044484  }
  0x29   :  { %v60_v9 = vld [vmem:[#allocation2 + $0x18] sm:$0xff]  ;;  %72 = vmax.xlane.f32.xlu1 %v71_v3  ;;  %v74_v10 = vmax.f32 %v63_v5, %v64_v6  ;;  %v1022_v12 = vld [vmem:[#allocation5 + $0x10] sm:$0xff]  ;;  %v1028_v15 = vld [vmem:[#allocation5 + $0x8] sm:$0xff]  ;;  %vm754_vm6 = vcmask 1045509   ;;  %vm756_vm7 = vcmask 1046534   ;;  %vm758_vm8 = vcmask 1047559  }
  0x2a   :  { %66 = vmax.xlane.f32.xlu0 %v65_v7  ;;  %v68_v11 = vmax.f32 %v59_v8, %v60_v9  ;;  %v1024_v13 = vld [vmem:[#allocation5 + $0x18] sm:$0xff]  ;;  %v77_v17 = vmax.f32 %v1026_v14, %v1028_v15  ;;  %v1034_v18 = vld [vmem:[#allocation5 + $0x30] sm:$0xff]  ;;  %v1038_v20 = vld [vmem:[#allocation5 + $0x20] sm:$0xff]  ;;  %v1050_v26 = vsub.s32 0, %v1047_v25  ;;  %v1057_v29 = vsub.s32 1, %v1047_v25 }
  0x2b   :  { %v80_v16 = vmax.f32 %v1022_v12, %v1024_v13  ;;  %v1036_v19 = vld [vmem:[#allocation5 + $0x38] sm:$0xff]  ;;  %v1040_v21 = vld [vmem:[#allocation5 + $0x28] sm:$0xff]  ;;  %v89_v27 = vld [vmem:[%s1230_s2] sm:$0x3]  ;;  %v347_v8 = vsub.s32 2, %v1047_v25  ;;  %vm785_vm9 = vcmask 15360  }
  0x2c   :  { %v86_v22 = vmax.f32 %v1034_v18, %v1036_v19  ;;  %v83_v23 = vmax.f32 %v1038_v20, %v1040_v21  ;;  %v95_v28 = vrot.slane %v89_v27, %v1050_v26  ;;  %v106_v30 = vrot.slane %v89_v27, %v1057_v29  ;;  %v90_v31 = vld [vmem:[%s1231_s3] sm:$0x3]  ;;  %v328_v4 = vld [vmem:[%s1232_s4 + $0x8] sm:$0xff] }
  0x2d   :  { %75 = vmax.xlane.f32.xlu1 %v74_v10  ;;  %v214_v33 = vrot.slane %v90_v31, %v1050_v26  ;;  %v225_v34 = vrot.slane %v90_v31, %v1057_v29  ;;  %v327_v0 = vld [vmem:[%s1232_s4] sm:$0xff]  ;;  %v390_v6 = vrot.slane %v328_v4, %v1050_v26  ;;  %v397_v9 = vrot.slane %v328_v4, %v1057_v29  ;;  %s961_s4 = smov [#allocation7]  }
  0x2e   :  { %69 = vmax.xlane.f32.xlu0 %v68_v11  ;;  %v334_v3 = vrot.slane %v327_v0, %v1050_v26  ;;  %v341_v7 = vrot.slane %v327_v0, %v1057_v29  ;;  %v404_v10 = vrot.slane %v328_v4, %v347_v8  ;;  %v354_v11 = vsub.s32 3, %v1047_v25  ;;  %s843_s23 = sshll.u32 %s961_s4, 4  ;;  %s844_s23 = int_to_ptr.vmem [resolvable:$true] %s843_s23 }
  0x2f   :  { %v368_v27 = vsub.s32 5, %v1047_v25  ;;  %s928_s24 = scalar_lea.vmem %s844_s23, 1024  ;;  %p933_p3 = scmp.lt.s32.totalorder %s844_s23, %s844_s23 }
  0x30   :  { %p929_p2 = scmp.ne.s32.totalorder %s844_s23, %s928_s24  ;;  %p934_p4 = scmp.lt.s32.totalorder %s928_s24, %s928_s24 }
  0x31   :  { %81 = vmax.xlane.f32.xlu1 %v80_v16  ;;  %v348_v16 = vrot.slane %v327_v0, %v347_v8  ;;  %v425_v29 = vrot.slane %v328_v4, %v368_v27  ;;  %v369_v31 = vrot.slane %v327_v0, %v368_v27 }
  0x32   :  { %78 = vmax.xlane.f32.xlu0 %v77_v17  ;;  %v411_v17 = vrot.slane %v328_v4, %v354_v11  ;;  %p935_p5 = por %p934_p4, %p933_p3 }
  0x34   :  { %p936_p6 = pnand %p935_p5, %p929_p2 }
  0x35   :  { %87 = vmax.xlane.f32.xlu1 %v86_v22  ;;  %v361_v22 = vsub.s32 4, %v1047_v25 }
  0x36   :  { %84 = vmax.xlane.f32.xlu0 %v83_v23  ;;  %v355_v23 = vrot.slane %v327_v0, %v354_v11 }
  0x37   :  { %v418_v26 = vrot.slane %v328_v4, %v361_v22 }
  0x46   :  { %101 = vbcast.lane.b32.xlu1 %v95_v28, 264 }
  0x4a   :  { %108 = vbcast.lane.b32.xlu1 %v106_v30, 256 }
  0x4c   :  { %97 = vbcast.lane.b32.xlu0 %v95_v28, 256  ;;  %v362_v28 = vrot.slane %v327_v0, %v361_v22 }
  0x4e   :  { %112 = vbcast.lane.b32.xlu1 %v106_v30, 264  ;;  %v375_v30 = vsub.s32 6, %v1047_v25 }
  0x50   :  { %216 = vbcast.lane.b32.xlu0 %v214_v33, 256  ;;  %v432_v32 = vrot.slane %v328_v4, %v375_v30 }
  0x52   :  { %220 = vbcast.lane.b32.xlu1 %v214_v33, 264  ;;  %v382_v33 = vsub.s32 7, %v1047_v25 }
  0x54   :  { %227 = vbcast.lane.b32.xlu0 %v225_v34, 256 }
  0x56   :  { %231 = vbcast.lane.b32.xlu1 %v225_v34, 264  ;;  %v376_v34 = vrot.slane %v327_v0, %v375_v30 }
  0xb6   :  { %v73_v35 = vpop.xlane.xlu1 %72 }
  0xb7   :  { %v67_v36 = vpop.xlane.xlu0 %66 }
  0xba   :  { %v76_v37 = vpop.xlane.xlu1 %75 }
  0xbb   :  { %v70_v38 = vpop.xlane.xlu0 %69 }
  0xbe   :  { %v82_v39 = vpop.xlane.xlu1 %81 }
  0xbf   :  { %v79_v40 = vpop.xlane.xlu0 %78 }
  0xc2   :  { %v88_v41 = vpop.xlane.xlu1 %87 }
  0xc3   :  { %v85_v42 = vpop.xlane.xlu0 %84 }
  0xc6   :  { %v102_v43 = vpop.permute.xlu1 %101 }
  0xc7   :  { %v119_v44 = vmul.f32 %v102_v43, %v70_v38  ;;  %v98_v45 = vpop.permute.xlu0 %97  ;;  %v123_v53 = vmul.f32 %v102_v43, %v76_v37 }
  0xc8   :  { %v118_v46 = vmul.f32 %v98_v45, %v67_v36  ;;  %v122_v50 = vmul.f32 %v98_v45, %v73_v35 }
  0xc9   :  { %138 = vperm.xlu1 %867, %v119_v44  }
  0xca   :  { %135 = vperm.xlu0 %866, %v118_v46   ;;  %v109_v47 = vpop.permute.xlu1 %108 }
  0xcb   :  { %v120_v48 = vmul.f32 %v109_v47, %v67_v36  ;;  %v217_v52 = vpop.permute.xlu0 %216  ;;  %v124_v54 = vmul.f32 %v109_v47, %v73_v35  ;;  %v439_v35 = vrot.slane %v328_v4, %v382_v33  ;;  %v383_v36 = vrot.slane %v327_v0, %v382_v33 }
  0xcc   :  { %v237_v56 = vmul.f32 %v217_v52, %v79_v40  ;;  %v241_v62 = vmul.f32 %v217_v52, %v85_v42 }
  0xcd   :  { %141 = vperm.xlu1 %867, %v120_v48  }
  0xce   :  { %v113_v49 = vpop.permute.xlu1 %112 }
  0xcf   :  { %v121_v51 = vmul.f32 %v113_v49, %v70_v38  ;;  %v125_v57 = vmul.f32 %v113_v49, %v76_v37  ;;  %v228_v58 = vpop.permute.xlu0 %227  ;;  %v159_v37 = vand.u32 127, %v92_v24 }
  0xd0   :  { %v239_v59 = vmul.f32 %v228_v58, %v79_v40  ;;  %v243_v1 = vmul.f32 %v228_v58, %v85_v42 }
  0xd1   :  { %147 = vperm.xlu1 %867, %v122_v50   ;;  %144 = vperm.xlu0 %866, %v121_v51   ;;  %v164_v38 = vadd.s32 4294967288, %v159_v37  ;;  %v1083_v40 = vsub.s32 %v159_v37, %v1047_v25 }
  0xd2   :  { %v221_v55 = vpop.permute.xlu1 %220 }
  0xd3   :  { %v238_v60 = vmul.f32 %v221_v55, %v82_v39  ;;  %v242_v2 = vmul.f32 %v221_v55, %v88_v41 }
  0xd5   :  { %153 = vperm.xlu1 %867, %v124_v54   ;;  %150 = vperm.xlu0 %866, %v123_v53  }
  0xd6   :  { %v232_v61 = vpop.permute.xlu1 %231 }
  0xd7   :  { %v240_v63 = vmul.f32 %v232_v61, %v82_v39  ;;  %v244_v5 = vmul.f32 %v232_v61, %v88_v41  ;;  %v167_v41 = vsub.s32 %v164_v38, %v1047_v25 }
  0xd9   :  { %156 = vperm.xlu0 %866, %v125_v57   ;;  %254 = vperm.xlu1 %867, %v237_v56  }
  0xdd   :  { %257 = vperm.xlu0 %866, %v238_v60   ;;  %260 = vperm.xlu1 %867, %v239_v59  }
  0xe1   :  { %263 = vperm.xlu0 %866, %v240_v63   ;;  %266 = vperm.xlu1 %867, %v241_v62  }
  0xe5   :  { %269 = vperm.xlu0 %866, %v242_v2   ;;  %272 = vperm.xlu1 %867, %v243_v1  }
  0xe9   :  { %275 = vperm.xlu0 %866, %v244_v5   ;;  %336 = vbcast.lane.b32.xlu1 %v334_v3, 256 }
  0xed   :  { %392 = vbcast.lane.b32.xlu1 %v390_v6, 256  ;;  %343 = vbcast.lane.b32.xlu0 %v341_v7, 256 }
  0xf1   :  { %399 = vbcast.lane.b32.xlu1 %v397_v9, 256  ;;  %406 = vbcast.lane.b32.xlu0 %v404_v10, 256 }
  0xf5   :  { %350 = vbcast.lane.b32.xlu1 %v348_v16, 256  ;;  %413 = vbcast.lane.b32.xlu0 %v411_v17, 256 }
  0xf9   :  { %357 = vbcast.lane.b32.xlu1 %v355_v23, 256  ;;  %420 = vbcast.lane.b32.xlu0 %v418_v26, 256 }
  0xfd   :  { %364 = vbcast.lane.b32.xlu1 %v362_v28, 256  ;;  %427 = vbcast.lane.b32.xlu0 %v425_v29, 256 }
 0x101   :  { %371 = vbcast.lane.b32.xlu1 %v369_v31, 256  ;;  %434 = vbcast.lane.b32.xlu0 %v432_v32, 256 }
 0x105   :  { %378 = vbcast.lane.b32.xlu1 %v376_v34, 256  ;;  %441 = vbcast.lane.b32.xlu0 %v439_v35, 256 }
 0x109   :  { %385 = vbcast.lane.b32.xlu1 %v383_v36, 256 }
 0x148   :  { %v139_v39 = vpop.permute.xlu1 %138 }
 0x149   :  { %v136_v42 = vpop.permute.xlu0 %135  ;;  %v168_v44 = vrot.slane %v139_v39, %v167_v41 }
 0x14a   :  { %v163_v45 = vrot.slane %v136_v42, %v1083_v40 }
 0x14c   :  { %v142_v43 = vpop.permute.xlu1 %141  ;;  %v170_v24 = vsel %vm169_vm0, %v168_v44, %v163_v45 }
 0x14d   :  { %v174_v48 = vrot.slane %v142_v43, %v1083_v40 }
 0x150   :  { %v148_v46 = vpop.permute.xlu1 %147  ;;  %v145_v47 = vpop.permute.xlu0 %144 }
 0x151   :  { %v178_v49 = vrot.slane %v145_v47, %v167_v41  ;;  %v183_v57 = vrot.slane %v148_v46, %v1083_v40 }
 0x153   :  { %v179_v50 = vsel %vm169_vm0, %v178_v49, %v174_v48 }
 0x154   :  { %v154_v51 = vpop.permute.xlu1 %153  ;;  %v151_v52 = vpop.permute.xlu0 %150  ;;  %v199_v25 = vsel %vm198_vm1, %v179_v50, %v170_v24 }
 0x155   :  { %v204_v53 = vsel %vm203_vm2, %v199_v25, 0.0  ;;  %v187_v54 = vrot.slane %v151_v52, %v167_v41  ;;  %v192_v58 = vrot.slane %v154_v51, %v1083_v40 }
 0x156   :  { %205 = vadd.xlane.f32.xlu1 %v204_v53 }
 0x157   :  { %v188_v60 = vsel %vm169_vm0, %v187_v54, %v183_v57 }
 0x158   :  { %v255_v55 = vpop.permute.xlu1 %254  ;;  %v157_v56 = vpop.permute.xlu0 %156 }
 0x159   :  { %v196_v59 = vrot.slane %v157_v56, %v167_v41  ;;  %v280_v5 = vrot.slane %v255_v55, %v1083_v40 }
 0x15b   :  { %v197_v61 = vsel %vm169_vm0, %v196_v59, %v192_v58 }
 0x15c   :  { %v261_v62 = vpop.permute.xlu1 %260  ;;  %v258_v63 = vpop.permute.xlu0 %257  ;;  %v200_v0 = vsel %vm198_vm1, %v197_v61, %v188_v60 }
 0x15d   :  { %v207_v1 = vsel %vm203_vm2, %v200_v0, 0.0  ;;  %v284_v2 = vrot.slane %v258_v63, %v167_v41  ;;  %v289_v6 = vrot.slane %v261_v62, %v1083_v40 }
 0x15e   :  { %208 = vadd.xlane.f32.xlu0 %v207_v1 }
 0x15f   :  { %v285_v8 = vsel %vm169_vm0, %v284_v2, %v280_v5 }
 0x160   :  { %v267_v3 = vpop.permute.xlu1 %266  ;;  %v264_v4 = vpop.permute.xlu0 %263 }
 0x161   :  { %v293_v7 = vrot.slane %v264_v4, %v167_v41  ;;  %v298_v26 = vrot.slane %v267_v3, %v1083_v40 }
 0x163   :  { %v294_v9 = vsel %vm169_vm0, %v293_v7, %v289_v6 }
 0x164   :  { %v270_v10 = vpop.permute.xlu0 %269  ;;  %v313_v11 = vsel %vm198_vm1, %v294_v9, %v285_v8  ;;  %v273_v17 = vpop.permute.xlu1 %272 }
 0x165   :  { %v317_v16 = vsel %vm203_vm2, %v313_v11, 0.0  ;;  %v302_v22 = vrot.slane %v270_v10, %v167_v41  ;;  %v307_v27 = vrot.slane %v273_v17, %v1083_v40 }
 0x166   :  { %318 = vadd.xlane.f32.xlu0 %v317_v16 }
 0x167   :  { %v303_v29 = vsel %vm169_vm0, %v302_v22, %v298_v26 }
 0x168   :  { %v276_v23 = vpop.permute.xlu0 %275  ;;  %v337_v33 = vpop.permute.xlu1 %336 }
 0x169   :  { %v311_v28 = vrot.slane %v276_v23, %v167_v41 }
 0x16b   :  { %v312_v30 = vsel %vm169_vm0, %v311_v28, %v307_v27 }
 0x16c   :  { %v314_v31 = vsel %vm198_vm1, %v312_v30, %v303_v29  ;;  %v393_v34 = vpop.permute.xlu1 %392  ;;  %v344_v35 = vpop.permute.xlu0 %343 }
 0x16d   :  { %v320_v32 = vsel %vm203_vm2, %v314_v31, 0.0 }
 0x16e   :  { %321 = vadd.xlane.f32.xlu0 %v320_v32 }
 0x170   :  { %v400_v36 = vpop.permute.xlu1 %399  ;;  %v407_v37 = vpop.permute.xlu0 %406 }
 0x174   :  { %v351_v38 = vpop.permute.xlu1 %350  ;;  %v414_v39 = vpop.permute.xlu0 %413 }
 0x178   :  { %v358_v42 = vpop.permute.xlu1 %357  ;;  %v421_v43 = vpop.permute.xlu0 %420 }
 0x17c   :  { %v365_v44 = vpop.permute.xlu1 %364  ;;  %v428_v41 = vpop.permute.xlu0 %427 }
 0x180   :  { %v372_v45 = vpop.permute.xlu1 %371  ;;  %v1110_v46 = vpop.permute.xlu0 %434 }
 0x184   :  { %v1112_v47 = vpop.permute.xlu1 %378  ;;  %v1114_v48 = vpop.permute.xlu0 %441 }
 0x188   :  { %v1116_v49 = vpop.permute.xlu1 %385 }
 0x1e3   :  { %v206_v50 = vpop.xlane.xlu1 %205 }
 0x1eb   :  { %v209_v24 = vpop.xlane.xlu0 %208 }
 0x1f3   :  { %v319_v51 = vpop.xlane.xlu0 %318 }
 0x1f4   :  { %v323_v52 = vadd.f32 %v319_v51, %v206_v50 }
 0x1f6   :  { %v325_v25 = vmax.f32 %v323_v52, 0.0 }
 0x1f8   :  { %v460_v53 = vmul.f32 %v344_v35, %v325_v25  ;;  %v459_v54 = vmul.f32 %v337_v33, %v325_v25  ;;  %v468_v57 = vmul.f32 %v400_v36, %v325_v25  ;;  %v467_v58 = vmul.f32 %v393_v34, %v325_v25 }
 0x1f9   :  { %v469_v0 = vmul.f32 %v407_v37, %v325_v25  ;;  %v461_v1 = vmul.f32 %v351_v38, %v325_v25  ;;  %v470_v4 = vmul.f32 %v414_v39, %v325_v25  ;;  %v462_v5 = vmul.f32 %v358_v42, %v325_v25 }
 0x1fa   :  { %527 = vperm.xlu0 %866, %v460_v53   ;;  %524 = vperm.xlu1 %867, %v459_v54   ;;  %v471_v8 = vmul.f32 %v421_v43, %v325_v25  ;;  %v463_v9 = vmul.f32 %v365_v44, %v325_v25  ;;  %v472_v16 = vmul.f32 %v428_v41, %v325_v25 }
 0x1fb   :  { %v322_v55 = vpop.xlane.xlu0 %321  ;;  %v464_v17 = vmul.f32 %v372_v45, %v325_v25  ;;  %v473_v26 = vmul.f32 %v1110_v46, %v325_v25  ;;  %v465_v27 = vmul.f32 %v1112_v47, %v325_v25  ;;  %v474_v30 = vmul.f32 %v1114_v48, %v325_v25 }
 0x1fc   :  { %v324_v56 = vadd.f32 %v322_v55, %v209_v24  ;;  %v466_v31 = vmul.f32 %v1116_v49, %v325_v25 }
 0x1fe   :  { %v326_v59 = vmax.f32 %v324_v56, 0.0  ;;  %551 = vperm.xlu0 %866, %v468_v57   ;;  %548 = vperm.xlu1 %867, %v467_v58  }
 0x200   :  { %v476_v60 = vmul.f32 %v344_v35, %v326_v59  ;;  %v475_v61 = vmul.f32 %v337_v33, %v326_v59  ;;  %v484_v62 = vmul.f32 %v400_v36, %v326_v59  ;;  %v483_v63 = vmul.f32 %v393_v34, %v326_v59 }
 0x201   :  { %v485_v2 = vmul.f32 %v407_v37, %v326_v59  ;;  %v477_v3 = vmul.f32 %v351_v38, %v326_v59  ;;  %v486_v6 = vmul.f32 %v414_v39, %v326_v59  ;;  %v478_v7 = vmul.f32 %v358_v42, %v326_v59 }
 0x202   :  { %575 = vperm.xlu0 %866, %v476_v60   ;;  %572 = vperm.xlu1 %867, %v475_v61   ;;  %v487_v10 = vmul.f32 %v421_v43, %v326_v59  ;;  %v479_v11 = vmul.f32 %v365_v44, %v326_v59  ;;  %v488_v22 = vmul.f32 %v428_v41, %v326_v59 }
 0x203   :  { %v480_v23 = vmul.f32 %v372_v45, %v326_v59  ;;  %v489_v28 = vmul.f32 %v1110_v46, %v326_v59  ;;  %v481_v29 = vmul.f32 %v1112_v47, %v326_v59  ;;  %v490_v32 = vmul.f32 %v1114_v48, %v326_v59 }
 0x204   :  { %v482_v33 = vmul.f32 %v1116_v49, %v326_v59 }
 0x206   :  { %599 = vperm.xlu0 %866, %v484_v62   ;;  %596 = vperm.xlu1 %867, %v483_v63  }
 0x20a   :  { %554 = vperm.xlu0 %866, %v469_v0   ;;  %530 = vperm.xlu1 %867, %v461_v1  }
 0x20e   :  { %602 = vperm.xlu0 %866, %v485_v2   ;;  %578 = vperm.xlu1 %867, %v477_v3  }
 0x212   :  { %557 = vperm.xlu0 %866, %v470_v4   ;;  %533 = vperm.xlu1 %867, %v462_v5  }
 0x216   :  { %605 = vperm.xlu0 %866, %v486_v6   ;;  %581 = vperm.xlu1 %867, %v478_v7  }
 0x21a   :  { %560 = vperm.xlu0 %866, %v471_v8   ;;  %536 = vperm.xlu1 %867, %v463_v9  }
 0x21e   :  { %608 = vperm.xlu0 %866, %v487_v10   ;;  %584 = vperm.xlu1 %867, %v479_v11  }
 0x222   :  { %563 = vperm.xlu0 %866, %v472_v16   ;;  %539 = vperm.xlu1 %867, %v464_v17  }
 0x226   :  { %611 = vperm.xlu0 %866, %v488_v22   ;;  %587 = vperm.xlu1 %867, %v480_v23  }
 0x22a   :  { %566 = vperm.xlu0 %866, %v473_v26   ;;  %542 = vperm.xlu1 %867, %v465_v27  }
 0x22e   :  { %614 = vperm.xlu0 %866, %v489_v28   ;;  %590 = vperm.xlu1 %867, %v481_v29  }
 0x232   :  { %569 = vperm.xlu0 %866, %v474_v30   ;;  %545 = vperm.xlu1 %867, %v466_v31  }
 0x236   :  { %617 = vperm.xlu0 %866, %v490_v32   ;;  %593 = vperm.xlu1 %867, %v482_v33  }
 0x279   :  { %v525_v34 = vpop.permute.xlu1 %524  ;;  %v528_v35 = vpop.permute.xlu0 %527 }
 0x27a   :  { %v622_v57 = vrot.slane %v525_v34, %v1083_v40  ;;  %v626_v58 = vrot.slane %v528_v35, %v1083_v40 }
 0x27c   :  { %v747_v5 = vsel %vm198_vm1, %v626_v58, %v622_v57 }
 0x27d   :  { %v549_v36 = vpop.permute.xlu1 %548  ;;  %v552_v37 = vpop.permute.xlu0 %551 }
 0x27e   :  { %v654_v59 = vrot.slane %v549_v36, %v1083_v40  ;;  %v658_v60 = vrot.slane %v552_v37, %v1083_v40 }
 0x280   :  { %v760_v8 = vsel %vm198_vm1, %v658_v60, %v654_v59 }
 0x281   :  { %v573_v38 = vpop.permute.xlu1 %572  ;;  %v576_v39 = vpop.permute.xlu0 %575 }
 0x282   :  { %v686_v61 = vrot.slane %v573_v38, %v1083_v40  ;;  %v690_v62 = vrot.slane %v576_v39, %v1083_v40 }
 0x284   :  { %v767_v16 = vsel %vm198_vm1, %v690_v62, %v686_v61 }
 0x285   :  { %v597_v42 = vpop.permute.xlu1 %596  ;;  %v600_v43 = vpop.permute.xlu0 %599 }
 0x286   :  { %v718_v1 = vrot.slane %v597_v42, %v1083_v40  ;;  %v722_v2 = vrot.slane %v600_v43, %v1083_v40 }
 0x288   :  { %v774_v28 = vsel %vm198_vm1, %v722_v2, %v718_v1 }
 0x289   :  { %v531_v44 = vpop.permute.xlu1 %530  ;;  %v555_v41 = vpop.permute.xlu0 %554 }
 0x28a   :  { %v630_v3 = vrot.slane %v531_v44, %v1083_v40  ;;  %v662_v4 = vrot.slane %v555_v41, %v1083_v40 }
 0x28c   :  { %v749_v29 = vsel %vm748_vm3, %v630_v3, %v747_v5  ;;  %v761_v30 = vsel %vm748_vm3, %v662_v4, %v760_v8 }
 0x28d   :  { %v579_v45 = vpop.permute.xlu1 %578  ;;  %v603_v46 = vpop.permute.xlu0 %602 }
 0x28e   :  { %v694_v6 = vrot.slane %v579_v45, %v1083_v40  ;;  %v726_v9 = vrot.slane %v603_v46, %v1083_v40 }
 0x290   :  { %v768_v32 = vsel %vm748_vm3, %v694_v6, %v767_v16  ;;  %v775_v36 = vsel %vm748_vm3, %v726_v9, %v774_v28 }
 0x291   :  { %v534_v47 = vpop.permute.xlu1 %533  ;;  %v558_v24 = vpop.permute.xlu0 %557 }
 0x292   :  { %v634_v7 = vrot.slane %v534_v47, %v1083_v40  ;;  %v666_v10 = vrot.slane %v558_v24, %v1083_v40 }
 0x294   :  { %v751_v33 = vsel %vm750_vm4, %v634_v7, %v749_v29  ;;  %v762_v37 = vsel %vm750_vm4, %v666_v10, %v761_v30 }
 0x295   :  { %v582_v50 = vpop.permute.xlu1 %581  ;;  %v1126_v48 = vpop.permute.xlu0 %605 }
 0x296   :  { %v698_v17 = vrot.slane %v582_v50, %v1083_v40  ;;  %v730_v38 = vrot.slane %v1126_v48, %v1083_v40 }
 0x298   :  { %v769_v42 = vsel %vm750_vm4, %v698_v17, %v768_v32 }
 0x299   :  { %v537_v49 = vpop.permute.xlu1 %536  ;;  %v561_v51 = vpop.permute.xlu0 %560 }
 0x29a   :  { %v638_v11 = vrot.slane %v537_v49, %v1083_v40  ;;  %v670_v22 = vrot.slane %v561_v51, %v1083_v40 }
 0x29c   :  { %v753_v39 = vsel %vm752_vm5, %v638_v11, %v751_v33  ;;  %v763_v43 = vsel %vm752_vm5, %v670_v22, %v762_v37 }
 0x29d   :  { %v1128_v52 = vpop.permute.xlu1 %584  ;;  %v1130_v25 = vpop.permute.xlu0 %608 }
 0x29e   :  { %v702_v44 = vrot.slane %v1128_v52, %v1083_v40  ;;  %v734_v49 = vrot.slane %v1130_v25, %v1083_v40 }
 0x2a0   :  { %v770_v59 = vsel %vm752_vm5, %v702_v44, %v769_v42 }
 0x2a1   :  { %v540_v53 = vpop.permute.xlu1 %539  ;;  %v564_v54 = vpop.permute.xlu0 %563 }
 0x2a2   :  { %v642_v23 = vrot.slane %v540_v53, %v1083_v40  ;;  %v674_v31 = vrot.slane %v564_v54, %v1083_v40  ;;  %v776_v54 = vsel %vm750_vm4, %v730_v38, %v775_v36 }
 0x2a3   :  { %v777_v2 = vsel %vm752_vm5, %v734_v49, %v776_v54 }
 0x2a4   :  { %v755_v41 = vsel %vm754_vm6, %v642_v23, %v753_v39  ;;  %v764_v47 = vsel %vm754_vm6, %v674_v31, %v763_v43 }
 0x2a5   :  { %v1132_v55 = vpop.permute.xlu1 %587  ;;  %v1134_v56 = vpop.permute.xlu0 %611 }
 0x2a6   :  { %v706_v24 = vrot.slane %v1132_v55, %v1083_v40  ;;  %v738_v57 = vrot.slane %v1134_v56, %v1083_v40 }
 0x2a8   :  { %v778_v4 = vsel %vm754_vm6, %v738_v57, %v777_v2 }
 0x2a9   :  { %v543_v63 = vpop.permute.xlu1 %542  ;;  %v567_v0 = vpop.permute.xlu0 %566 }
 0x2aa   :  { %v646_v34 = vrot.slane %v543_v63, %v1083_v40  ;;  %v678_v35 = vrot.slane %v567_v0, %v1083_v40  ;;  %v771_v0 = vsel %vm754_vm6, %v706_v24, %v770_v59 }
 0x2ac   :  { %v757_v52 = vsel %vm756_vm7, %v646_v34, %v755_v41  ;;  %v765_v53 = vsel %vm756_vm7, %v678_v35, %v764_v47 }
 0x2ad   :  { %v591_v26 = vpop.permute.xlu1 %590  ;;  %v615_v27 = vpop.permute.xlu0 %614 }
 0x2ae   :  { %v710_v51 = vrot.slane %v591_v26, %v1083_v40  ;;  %v742_v60 = vrot.slane %v615_v27, %v1083_v40 }
 0x2b0   :  { %v772_v3 = vsel %vm756_vm7, %v710_v51, %v771_v0  ;;  %v779_v7 = vsel %vm756_vm7, %v742_v60, %v778_v4 }
 0x2b1   :  { %v546_v45 = vpop.permute.xlu1 %545  ;;  %v570_v46 = vpop.permute.xlu0 %569 }
 0x2b2   :  { %v650_v50 = vrot.slane %v546_v45, %v1083_v40  ;;  %v682_v48 = vrot.slane %v570_v46, %v1083_v40 }
 0x2b4   :  { %v759_v55 = vsel %vm758_vm8, %v650_v50, %v757_v52  ;;  %v766_v58 = vsel %vm758_vm8, %v682_v48, %v765_v53 }
 0x2b5   :  { %v594_v25 = vpop.permute.xlu1 %593  ;;  %v618_v61 = vpop.permute.xlu0 %617  ;;  %v786_v62 = vsel %vm785_vm9, %v759_v55, 0.0  ;;  %v789_v63 = vsel %vm785_vm9, %v766_v58, 0.0 }
 0x2b6   :  { %v714_v1 = vrot.slane %v594_v25, %v1083_v40  ;;  %v746_v56 = vrot.slane %v618_v61, %v1083_v40  ;;  %787 = vadd.xlane.f32.xlu1 %v786_v62  ;;  %790 = vadd.xlane.f32.xlu0 %v789_v63 }
 0x2b8   :  { %v773_v5 = vsel %vm758_vm8, %v714_v1, %v772_v3  ;;  %v780_v8 = vsel %vm758_vm8, %v746_v56, %v779_v7 }
 0x2b9   :  { %v792_v6 = vsel %vm785_vm9, %v773_v5, 0.0  ;;  %v795_v9 = vsel %vm785_vm9, %v780_v8, 0.0 }
 0x2ba   :  { %793 = vadd.xlane.f32.xlu0 %v792_v6 }
 0x2be   :  { %796 = vadd.xlane.f32.xlu0 %v795_v9 }
 0x343   :  { %v788_v40 = vpop.xlane.xlu1 %787  ;;  %v791_v10 = vpop.xlane.xlu0 %790 }
 0x344   :  { %v856_v11 = vmul.f32 -1.442695, %v788_v40  ;;  %v857_v16 = vmul.f32 -1.442695, %v791_v10 }
 0x346   :  { %868 = vpow2.f32 %v856_v11 }
 0x347   :  { %870 = vpow2.f32 %v857_v16  ;;  %v794_v17 = vpop.xlane.xlu0 %793 }
 0x348   :  { %v858_v22 = vmul.f32 -1.442695, %v794_v17 }
 0x34a   :  { %872 = vpow2.f32 %v858_v22 }
 0x34b   :  { %v797_v23 = vpop.xlane.xlu0 %796 }
 0x34c   :  { %v859_v26 = vmul.f32 -1.442695, %v797_v23 }
 0x34e   :  { %874 = vpow2.f32 %v859_v26 }
 0x350   :  { %v869_v27 = vpop.eup %868 }
 0x351   :  { %v871_v28 = vpop.eup %870  ;;  %v810_v29 = vadd.f32 1.0, %v869_v27 }
 0x352   :  { %v811_v30 = vadd.f32 1.0, %v871_v28 }
 0x353   :  { %876 = vrcp.f32 %v810_v29 }
 0x354   :  { %v873_v31 = vpop.eup %872  ;;  %878 = vrcp.f32 %v811_v30 }
 0x355   :  { %v812_v32 = vadd.f32 1.0, %v873_v31 }
 0x357   :  { %880 = vrcp.f32 %v812_v32 }
 0x358   :  { %v875_v33 = vpop.eup %874 }
 0x359   :  { %v813_v34 = vadd.f32 1.0, %v875_v33 }
 0x35b   :  { %882 = vrcp.f32 %v813_v34 }
 0x35d   :  { %v877_v35 = vpop.eup %876 }
 0x35e   :  { %v879_v36 = vpop.eup %878  ;;  %v822_v37 = vmul.f32 %v877_v35, %v1026_v14  ;;  %v823_v38 = vmul.f32 %v877_v35, %v1028_v15 }
 0x35f   :  { %v824_v39 = vmul.f32 %v879_v36, %v1022_v12  ;;  %v825_v42 = vmul.f32 %v879_v36, %v1024_v13 }
 0x360   :  { %830 = vst [vmem:[#allocation7] sm:$0xff] %v822_v37  ;;  %831 = vst [vmem:[#allocation7 + $0x8] sm:$0xff] %v823_v38 }
 0x361   :  { %v881_v43 = vpop.eup %880  ;;  %832 = vst [vmem:[#allocation7 + $0x10] sm:$0xff] %v824_v39  ;;  %833 = vst [vmem:[#allocation7 + $0x18] sm:$0xff] %v825_v42 }
 0x362   :  { %v826_v44 = vmul.f32 %v881_v43, %v1038_v20  ;;  %v827_v41 = vmul.f32 %v881_v43, %v1040_v21 }
 0x364   :  { %834 = vst [vmem:[#allocation7 + $0x20] sm:$0xff] %v826_v44  ;;  %835 = vst [vmem:[#allocation7 + $0x28] sm:$0xff] %v827_v41 }
 0x365   :  { %v883_v14 = vpop.eup %882 }
 0x366   :  { %v828_v15 = vmul.f32 %v883_v14, %v1034_v18  ;;  %v829_v12 = vmul.f32 %v883_v14, %v1036_v19 }
 0x368   :  { %836 = vst [vmem:[#allocation7 + $0x30] sm:$0xff] %v828_v15  ;;  %837 = vst [vmem:[#allocation7 + $0x38] sm:$0xff] %v829_v12 }
 0x369   :  { %939 = shalt.err (!%p936_p6)
}
 0x36a   :  { %s940_s27 = scalar_lea.hbm %s1233_s5, 1024 }
 0x36b   :  { %p941_p7 = scmp.ne.s32.totalorder %s1233_s5, %s940_s27  ;;  %p944_p8 = scmp.lt.u32.totalorder %s940_s27, %s1233_s5 }
 0x36d   :  { %p946_p9 = pnand %p944_p8, %p941_p7 }
 0x36f   :  { %949 = shalt.err (!%p946_p9)
}
 0x370   :  { %849 = dma.vmem_to_hbm [thread:$0]  %s844_s23, 1024, %s1233_s5, [#allocation4], %s957_s28, %s957_s28, %s958_s29  }
 0x371   :  { %954 = dma.done.wait [#allocation4], 1024  }
 0x372   :  { %955 = vsyncadd [#allocation4], 4294966272 }
 0x373   :  { %853 = vsyncpa [#allocation3], 1 }
 0x374   :  { %854 = vsyncpa [#allocation6], 1 }
 0x375   :  { %855 = vsyncpa [#allocation4], 1 }

</bundles_post_ra>
